<compile_context>
chip_gen: v5e
topology: v5e:2x2
jax: 0.10.0
libtpu: 0.0.40
codegen_flags: <defaults>
</compile_context>

<pallas_src>
import math

import jax
import jax.numpy as jnp
from jax.experimental import pallas as pl
from jax.experimental.pallas import tpu as pltpu


# ---------------------------------------------------------------------------
# helpers
# ---------------------------------------------------------------------------

def _round_up(x, m):
    return (x + m - 1) // m * m


def _sublane(dtype):
    # second-minor alignment: 8 for 4-byte dtypes, 16 for 2-byte dtypes
    return 8 if jnp.dtype(dtype).itemsize >= 4 else 16


def _pack_weight(w, rows_pad, hidden, hidden_pad):
    """PyTorch-convention weight [4*hidden, rows] -> kernel layout.

    Returns [rows_pad, 4*hidden_pad]: transposed, with each of the four gate
    column-blocks zero-padded from `hidden` to `hidden_pad` so gate slabs are
    128-lane aligned.
    """
    rows = w.shape[1]
    wt = jnp.transpose(w).reshape(rows, 4, hidden)
    wt = jnp.pad(wt, ((0, rows_pad - rows), (0, 0), (0, hidden_pad - hidden)))
    return wt.reshape(rows_pad, 4 * hidden_pad)


# ---------------------------------------------------------------------------
# single-step kernel (one fused matmul over concatenated [x, h])
# ---------------------------------------------------------------------------

def _lstm_step_kernel(x_ref, h_ref, c_ref, w_ref, h_out_ref, c_out_ref):
    # Fuse the two projections: [B, I+H] @ [I+H, 4H] (single MXU chain).
    xh = jnp.concatenate([x_ref[...], h_ref[...]], axis=-1)
    gates = jnp.dot(xh.astype(w_ref.dtype), w_ref[...],
                    preferred_element_type=jnp.float32)

    Hp = h_ref.shape[-1]           # lane-aligned (multiple of 128)
    i_g = jax.nn.sigmoid(gates[:, 0 * Hp:1 * Hp])
    f_g = jax.nn.sigmoid(gates[:, 1 * Hp:2 * Hp])
    g_g = jnp.tanh(gates[:, 2 * Hp:3 * Hp])
    o_g = jax.nn.sigmoid(gates[:, 3 * Hp:4 * Hp])

    c_new = f_g * c_ref[...].astype(jnp.float32) + i_g * g_g
    h_new = o_g * jnp.tanh(c_new)

    c_out_ref[...] = c_new.astype(c_out_ref.dtype)
    h_out_ref[...] = h_new.astype(h_out_ref.dtype)


def lstm_cell_step(x, h0, c0, w_cat, *, hidden_size, i_pad, h_pad):
    """One LSTM step. w_cat: persistent [i_pad + h_pad, 4*h_pad] kernel weights."""
    B, I = x.shape
    H = hidden_size
    Gp = 4 * h_pad
    sub = _sublane(x.dtype)
    Bp = _round_up(max(B, sub), sub)
    bt = sub                                    # batch tile

    x_p = jnp.pad(x, ((0, Bp - B), (0, i_pad - I)))
    h0_p = jnp.pad(h0, ((0, Bp - B), (0, h_pad - H)))
    c0_p = jnp.pad(c0, ((0, Bp - B), (0, h_pad - H)))

    h1, c1 = pl.pallas_call(
        _lstm_step_kernel,
        out_shape=(jax.ShapeDtypeStruct((Bp, h_pad), x.dtype),
                   jax.ShapeDtypeStruct((Bp, h_pad), x.dtype)),
        grid_spec=pltpu.PrefetchScalarGridSpec(
            num_scalar_prefetch=0,
            grid=(Bp // bt,),
            in_specs=[
                pl.BlockSpec((bt, i_pad), lambda b: (b, 0)),
                pl.BlockSpec((bt, h_pad), lambda b: (b, 0)),
                pl.BlockSpec((bt, h_pad), lambda b: (b, 0)),
                # constant index_map -> weights DMA'd once, stay VMEM resident
                pl.BlockSpec((i_pad + h_pad, Gp), lambda b: (0, 0)),
            ],
            out_specs=[
                pl.BlockSpec((bt, h_pad), lambda b: (b, 0)),
                pl.BlockSpec((bt, h_pad), lambda b: (b, 0)),
            ],
        ),
        compiler_params=pltpu.CompilerParams(
            dimension_semantics=("parallel",),
            vmem_limit_bytes=64 * 1024 * 1024),
    )(x_p, h0_p, c0_p, w_cat)

    return h1[:B, :H], c1[:B, :H]


# ---------------------------------------------------------------------------
# sequence kernel: recurrent loop inside the grid, w_hh VMEM-resident,
# h/c carried in VMEM scratch, x-projection hoisted out of the recurrence.
# ---------------------------------------------------------------------------

def _lstm_seq_kernel(xg_ref, whh_ref, h0_ref, c0_ref,
                     hseq_ref, c_out_ref, h_sc, c_sc):
    t = pl.program_id(1)

    @pl.when(t == 0)
    def _():
        h_sc[...] = h0_ref[...].astype(jnp.float32)
        c_sc[...] = c0_ref[...].astype(jnp.float32)

    # gates = (precomputed x-projection) + h_{t-1} @ w_hh^T
    gates = xg_ref[0] + jnp.dot(h_sc[...].astype(whh_ref.dtype), whh_ref[...],
                                preferred_element_type=jnp.float32)

    Hp = h_sc.shape[-1]
    i_g = jax.nn.sigmoid(gates[:, 0 * Hp:1 * Hp])
    f_g = jax.nn.sigmoid(gates[:, 1 * Hp:2 * Hp])
    g_g = jnp.tanh(gates[:, 2 * Hp:3 * Hp])
    o_g = jax.nn.sigmoid(gates[:, 3 * Hp:4 * Hp])

    c_new = f_g * c_sc[...] + i_g * g_g
    h_new = o_g * jnp.tanh(c_new)

    c_sc[...] = c_new
    h_sc[...] = h_new

    hseq_ref[0] = h_new.astype(hseq_ref.dtype)
    c_out_ref[...] = c_new.astype(c_out_ref.dtype)


def lstm_cell_sequence(x_seq, h0, c0, wih_t, whh_t, *, hidden_size, i_pad, h_pad):
    """Run T LSTM steps with weights resident across the time loop.

    x_seq: [T, B, I] (seq-major, matching the module's not-batch-first rule).
    Returns (h_seq [T,B,H], h_final [B,H], c_final [B,H]).
    """
    T, B, I = x_seq.shape
    H = hidden_size
    Gp = 4 * h_pad
    sub = _sublane(x_seq.dtype)
    Bp = _round_up(max(B, sub), sub)
    bt = sub

    # Hoisted input projection: one large matmul over all T*B rows (no
    # sequential dependence) -> only w_hh must stay resident in the kernel.
    x_p = jnp.pad(x_seq, ((0, 0), (0, Bp - B), (0, i_pad - I)))
    xg = jnp.dot(x_p.reshape(T * Bp, i_pad).astype(wih_t.dtype), wih_t,
                 preferred_element_type=jnp.float32).reshape(T, Bp, Gp)

    h0_p = jnp.pad(h0, ((0, Bp - B), (0, h_pad - H)))
    c0_p = jnp.pad(c0, ((0, Bp - B), (0, h_pad - H)))

    h_seq, c_fin = pl.pallas_call(
        _lstm_seq_kernel,
        out_shape=(jax.ShapeDtypeStruct((T, Bp, h_pad), x_seq.dtype),
                   jax.ShapeDtypeStruct((Bp, h_pad), x_seq.dtype)),
        grid_spec=pltpu.PrefetchScalarGridSpec(
            num_scalar_prefetch=0,
            grid=(Bp // bt, T),                       # (batch tiles, time)
            in_specs=[
                pl.BlockSpec((1, bt, Gp), lambda b, t: (t, b, 0)),
                # constant index_map: w_hh DMA'd once per batch tile / core
                pl.BlockSpec((h_pad, Gp), lambda b, t: (0, 0)),
                pl.BlockSpec((bt, h_pad), lambda b, t: (b, 0)),
                pl.BlockSpec((bt, h_pad), lambda b, t: (b, 0)),
            ],
            out_specs=[
                pl.BlockSpec((1, bt, h_pad), lambda b, t: (t, b, 0)),
                pl.BlockSpec((bt, h_pad), lambda b, t: (b, 0)),
            ],
            scratch_shapes=[pltpu.VMEM((bt, h_pad), jnp.float32),   # h carry
                            pltpu.VMEM((bt, h_pad), jnp.float32)],  # c carry
        ),
        compiler_params=pltpu.CompilerParams(
            dimension_semantics=("parallel", "arbitrary"),
            vmem_limit_bytes=64 * 1024 * 1024),
    )(xg, whh_t, h0_p, c0_p)

    return h_seq[:, :B, :H], h_seq[-1, :B, :H], c_fin[:B, :H]


# ---------------------------------------------------------------------------
# module mirror
# ---------------------------------------------------------------------------

class RNNCellPallas:
    """Mirror of apex RNNCell (gate_multiplier=4, LSTM cell, bias=False).

    Note: self.hidden is mutable Python state (like the torch module) -- use
    eagerly; the functional wrappers above are jit-safe.
    """

    def __init__(self, gate_multiplier, input_size, hidden_size,
                 n_hidden_states=2, bias=False, output_size=None,
                 key=None, param_dtype=jnp.bfloat16):
        assert gate_multiplier == 4 and n_hidden_states == 2 and not bias
        self.input_size = input_size
        self.hidden_size = hidden_size
        self.output_size = hidden_size if output_size is None else output_size
        assert self.output_size == hidden_size   # no w_ho projection branch
        self.gate_size = gate_multiplier * hidden_size
        self.n_hidden_states = n_hidden_states
        self.param_dtype = param_dtype

        # reset_parameters(): uniform(-stdev, stdev), stdev = 1/sqrt(hidden_size)
        stdev = 1.0 / math.sqrt(hidden_size)
        k1, k2 = jax.random.split(key)
        self.w_ih = jax.random.uniform(
            k1, (self.gate_size, input_size), jnp.float32, -stdev, stdev)
        self.w_hh = jax.random.uniform(
            k2, (self.gate_size, self.output_size), jnp.float32, -stdev, stdev)

        # Persistent kernel-layout weights, built ONCE (no per-call transpose):
        # transposed, gate-padded to 128 lanes, cast to param_dtype, and
        # concatenated into a single [I+H, 4H] slab for the fused step matmul.
        self.i_pad = _round_up(input_size, 128)
        self.h_pad = _round_up(hidden_size, 128)
        self.wih_t = _pack_weight(self.w_ih, self.i_pad,
                                  hidden_size, self.h_pad).astype(param_dtype)
        self.whh_t = _pack_weight(self.w_hh, self.h_pad,
                                  hidden_size, self.h_pad).astype(param_dtype)
        self.w_cat = jnp.concatenate([self.wih_t, self.whh_t], axis=0)

        self.hidden = [None for _ in range(self.n_hidden_states)]

    def init_hidden(self, bsz, dtype):
        for i in range(self.n_hidden_states):
            size = self.output_size if i == 0 else self.hidden_size
            if self.hidden[i] is None or self.hidden[i].shape[0] != bsz:
                self.hidden[i] = jnp.zeros((bsz, size), dtype)

    def __call__(self, x):
        """One step (matches RNNCell.forward)."""
        self.init_hidden(x.shape[0], x.dtype)
        h1, c1 = lstm_cell_step(x, self.hidden[0], self.hidden[1], self.w_cat,
                                hidden_size=self.hidden_size,
                                i_pad=self.i_pad, h_pad=self.h_pad)
        self.hidden = [h1, c1]
        return tuple(self.hidden)

    def run_sequence(self, x_seq):
        """T steps with weights resident across the time loop (perf path)."""
        self.init_hidden(x_seq.shape[1], x_seq.dtype)
        h_seq, h_fin, c_fin = lstm_cell_sequence(
            x_seq, self.hidden[0], self.hidden[1], self.wih_t, self.whh_t,
            hidden_size=self.hidden_size, i_pad=self.i_pad, h_pad=self.h_pad)
        self.hidden = [h_fin, c_fin]
        return h_seq, (h_fin, c_fin)


# ---------------------------------------------------------------------------
# reference + test
# ---------------------------------------------------------------------------

def _reference_step(x, h0, c0, w_ih, w_hh):
    gates = (jnp.dot(x, w_ih.T, precision=jax.lax.Precision.HIGHEST)
             + jnp.dot(h0, w_hh.T, precision=jax.lax.Precision.HIGHEST))
    H = h0.shape[-1]
    i = jax.nn.sigmoid(gates[:, 0 * H:1 * H])
    f = jax.nn.sigmoid(gates[:, 1 * H:2 * H])
    g = jnp.tanh(gates[:, 2 * H:3 * H])
    o = jax.nn.sigmoid(gates[:, 3 * H:4 * H])
    c1 = f * c0 + i * g
    h1 = o * jnp.tanh(c1)
    return h1, c1


if __name__ == "__main__":
    key = jax.random.PRNGKey(0)
    k_p1, k_p2, k_x, k_xs = jax.random.split(key, 4)

    # ---- f32 cell, odd shapes (exercise B / I / H padding), two steps ----
    B, INPUT, HIDDEN = 5, 32, 48
    cell32 = RNNCellPallas(gate_multiplier=4, input_size=INPUT,
                           hidden_size=HIDDEN, key=k_p1,
                           param_dtype=jnp.float32)
    x = jax.random.normal(k_x, (B, INPUT), jnp.float32)

    h1, c1 = cell32(x)
    jax.block_until_ready((h1, c1))
    zeros = jnp.zeros((B, HIDDEN), jnp.float32)
    h_ref, c_ref = _reference_step(x, zeros, zeros, cell32.w_ih, cell32.w_hh)
    assert jnp.allclose(h1, h_ref, atol=1e-4, rtol=1e-4)
    assert jnp.allclose(c1, c_ref, atol=1e-4, rtol=1e-4)

    h2, c2 = cell32(x)   # state carry check
    h_ref2, c_ref2 = _reference_step(x, h_ref, c_ref, cell32.w_ih, cell32.w_hh)
    assert jnp.allclose(h2, h_ref2, atol=5e-4, rtol=5e-4)
    assert jnp.allclose(c2, c_ref2, atol=5e-4, rtol=5e-4)

    # ---- bf16-weight cell, sequence kernel (weights resident across T) ----
    T, B2, I2, H2 = 6, 8, 64, 128
    cell16 = RNNCellPallas(gate_multiplier=4, input_size=I2,
                           hidden_size=H2, key=k_p2,
                           param_dtype=jnp.bfloat16)
    xs = jax.random.normal(k_xs, (T, B2, I2), jnp.float32)

    h_seq, (h_fin, c_fin) = cell16.run_sequence(xs)
    jax.block_until_ready((h_seq, h_fin, c_fin))

    # reference with the same bf16-rounded weights the kernel stores
    w_ih_q = cell16.w_ih.astype(jnp.bfloat16).astype(jnp.float32)
    w_hh_q = cell16.w_hh.astype(jnp.bfloat16).astype(jnp.float32)
    h_r = jnp.zeros((B2, H2), jnp.float32)
    c_r = jnp.zeros((B2, H2), jnp.float32)
    for t in range(T):
        h_r, c_r = _reference_step(xs[t], h_r, c_r, w_ih_q, w_hh_q)
        assert jnp.allclose(h_seq[t], h_r, atol=2e-2, rtol=2e-2), f"step {t}"
    assert jnp.allclose(h_fin, h_r, atol=2e-2, rtol=2e-2)
    assert jnp.allclose(c_fin, c_r, atol=5e-2, rtol=5e-2)

    print("KERNEL_OK")
</pallas_src>

<mosaic_0001>
module attributes {stable_mosaic.version = 11 : i64} {
  func.func @_lstm_step_kernel(%arg0: i32, %arg1: memref<8x128xf32, #tpu.memory_space<vmem>>, %arg2: memref<8x128xf32, #tpu.memory_space<vmem>>, %arg3: memref<8x128xf32, #tpu.memory_space<vmem>>, %arg4: memref<256x512xf32, #tpu.memory_space<vmem>>, %arg5: memref<8x128xf32, #tpu.memory_space<vmem>>, %arg6: memref<8x128xf32, #tpu.memory_space<vmem>>) attributes {dimension_semantics = [#tpu.dimension_semantics<parallel>], iteration_bounds = array<i64: 1>, scalar_prefetch = 0 : i64, scratch_operands = 0 : i64, tpu.core_type = #tpu.core_type<tc>, window_params = [{transform_indices = @transform_0, window_bounds = array<i64: 8, 128>}, {transform_indices = @transform_1, window_bounds = array<i64: 8, 128>}, {transform_indices = @transform_2, window_bounds = array<i64: 8, 128>}, {pipeline_mode = #tpu.pipeline_mode<synchronous>, transform_indices = @transform_3, window_bounds = array<i64: 256, 512>}, {transform_indices = @transform_4, window_bounds = array<i64: 8, 128>}, {transform_indices = @transform_5, window_bounds = array<i64: 8, 128>}]} {
    %c0 = arith.constant 0 : index
    %c0_0 = arith.constant 0 : index
    %0 = vector.load %arg1[%c0, %c0_0] : memref<8x128xf32, #tpu.memory_space<vmem>>, vector<8x128xf32>
    %c0_1 = arith.constant 0 : index
    %c0_2 = arith.constant 0 : index
    %1 = vector.load %arg2[%c0_1, %c0_2] : memref<8x128xf32, #tpu.memory_space<vmem>>, vector<8x128xf32>
    %2 = tpu.concatenate %0, %1 in 1 : vector<8x128xf32>, vector<8x128xf32> -> vector<8x256xf32>
    %c0_3 = arith.constant 0 : index
    %c0_4 = arith.constant 0 : index
    %3 = vector.load %arg4[%c0_3, %c0_4] : memref<256x512xf32, #tpu.memory_space<vmem>>, vector<256x512xf32>
    %cst = arith.constant dense<0.000000e+00> : vector<8x512xf32>
    %4 = tpu.matmul %2, %3, %cst {dimension_numbers = #tpu.dot_dimension_numbers<[1], [0], [0], [1], [0, 0, 1, 1], [], []>} : vector<8x256xf32>, vector<256x512xf32>, vector<8x512xf32> -> vector<8x512xf32>
    %5 = vector.extract_strided_slice %4 {offsets = [0, 0], sizes = [8, 128], strides = [1, 1]} : vector<8x512xf32> to vector<8x128xf32>
    %6 = arith.negf %5 : vector<8x128xf32>
    %7 = math.exp %6 : vector<8x128xf32>
    %cst_5 = arith.constant 1.000000e+00 : f32
    %8 = vector.broadcast %cst_5 : f32 to vector<8x128xf32>
    %9 = arith.addf %8, %7 : vector<8x128xf32>
    %10 = arith.divf %8, %9 : vector<8x128xf32>
    %11 = vector.extract_strided_slice %4 {offsets = [0, 128], sizes = [8, 128], strides = [1, 1]} : vector<8x512xf32> to vector<8x128xf32>
    %12 = arith.negf %11 : vector<8x128xf32>
    %13 = math.exp %12 : vector<8x128xf32>
    %cst_6 = arith.constant 1.000000e+00 : f32
    %14 = vector.broadcast %cst_6 : f32 to vector<8x128xf32>
    %15 = arith.addf %14, %13 : vector<8x128xf32>
    %16 = arith.divf %14, %15 : vector<8x128xf32>
    %17 = vector.extract_strided_slice %4 {offsets = [0, 256], sizes = [8, 128], strides = [1, 1]} : vector<8x512xf32> to vector<8x128xf32>
    %18 = math.tanh %17 : vector<8x128xf32>
    %19 = vector.extract_strided_slice %4 {offsets = [0, 384], sizes = [8, 128], strides = [1, 1]} : vector<8x512xf32> to vector<8x128xf32>
    %20 = arith.negf %19 : vector<8x128xf32>
    %21 = math.exp %20 : vector<8x128xf32>
    %cst_7 = arith.constant 1.000000e+00 : f32
    %22 = vector.broadcast %cst_7 : f32 to vector<8x128xf32>
    %23 = arith.addf %22, %21 : vector<8x128xf32>
    %24 = arith.divf %22, %23 : vector<8x128xf32>
    %c0_8 = arith.constant 0 : index
    %c0_9 = arith.constant 0 : index
    %25 = vector.load %arg3[%c0_8, %c0_9] : memref<8x128xf32, #tpu.memory_space<vmem>>, vector<8x128xf32>
    %26 = arith.mulf %16, %25 : vector<8x128xf32>
    %27 = arith.mulf %10, %18 : vector<8x128xf32>
    %28 = arith.addf %26, %27 : vector<8x128xf32>
    %29 = math.tanh %28 : vector<8x128xf32>
    %30 = arith.mulf %24, %29 : vector<8x128xf32>
    %c0_10 = arith.constant 0 : index
    %c0_11 = arith.constant 0 : index
    %31 = vector.load %arg6[%c0_10, %c0_11] : memref<8x128xf32, #tpu.memory_space<vmem>>, vector<8x128xf32>
    tpu.vector_store %arg6[%c0_10, %c0_11], %28 {strides = array<i32>} : memref<8x128xf32, #tpu.memory_space<vmem>>, vector<8x128xf32>,
    %c0_12 = arith.constant 0 : index
    %c0_13 = arith.constant 0 : index
    %32 = vector.load %arg5[%c0_12, %c0_13] : memref<8x128xf32, #tpu.memory_space<vmem>>, vector<8x128xf32>
    tpu.vector_store %arg5[%c0_12, %c0_13], %30 {strides = array<i32>} : memref<8x128xf32, #tpu.memory_space<vmem>>, vector<8x128xf32>,
    return
  }
  func.func @transform_0(%arg0: i32) -> (i32, i32) {
    %c0_i32 = arith.constant 0 : i32
    %c0_i32_0 = arith.constant 0 : i32
    return %arg0, %c0_i32 : i32, i32
  }
  func.func @transform_1(%arg0: i32) -> (i32, i32) {
    %c0_i32 = arith.constant 0 : i32
    %c0_i32_0 = arith.constant 0 : i32
    return %arg0, %c0_i32 : i32, i32
  }
  func.func @transform_2(%arg0: i32) -> (i32, i32) {
    %c0_i32 = arith.constant 0 : i32
    %c0_i32_0 = arith.constant 0 : i32
    return %arg0, %c0_i32 : i32, i32
  }
  func.func @transform_3(%arg0: i32) -> (i32, i32) {
    %c0_i32 = arith.constant 0 : i32
    %c0_i32_0 = arith.constant 0 : i32
    %c0_i32_1 = arith.constant 0 : i32
    return %c0_i32, %c0_i32_0 : i32, i32
  }
  func.func @transform_4(%arg0: i32) -> (i32, i32) {
    %c0_i32 = arith.constant 0 : i32
    %c0_i32_0 = arith.constant 0 : i32
    return %arg0, %c0_i32 : i32, i32
  }
  func.func @transform_5(%arg0: i32) -> (i32, i32) {
    %c0_i32 = arith.constant 0 : i32
    %c0_i32_0 = arith.constant 0 : i32
    return %arg0, %c0_i32 : i32, i32
  }
}

</mosaic_0001>

<bundles_post_ra>
// kernel: tpu_custom_call.1
= control target key start
LH: loop header
LB: loop body
LE: loop exit
PB: predicated region body
PF: predicated region fallthrough
CT: control target
= control target key end

     0   :  { %11 = vsyncpa [#allocation3], 0  ;;  %s724_s0 = inlined_call_operand.hbm [shape: f32[8,128], index: 0, kind: input, shape index: {}]   ;;  %s725_s1 = inlined_call_operand.hbm [shape: f32[8,128], index: 1, kind: input, shape index: {}]   ;;  %s726_s2 = inlined_call_operand.hbm [shape: f32[8,128], index: 2, kind: input, shape index: {}]   ;;  %s727_s3 = inlined_call_operand.hbm [shape: f32[256,512], index: 3, kind: input, shape index: {}]   ;;  %s728_s4 = inlined_call_operand.hbm [shape: f32[8,128], index: 4, kind: output, shape index: {0}]   ;;  %s729_s5 = inlined_call_operand.hbm [shape: f32[8,128], index: 5, kind: output, shape index: {1}]  }
   0x1   :  { %12 = vsyncpa [#allocation6], 0 }
   0x2   :  { %13 = vsyncpa [#allocation9], 0 }
   0x3   :  { %14 = vsyncpa [#allocation4], 0  ;;  %s32_s20 = sshll.u32 %s725_s1, 4  ;;  %s33_s20 = int_to_ptr.hbm [resolvable:$true] %s32_s20 }
   0x4   :  { %15 = vsyncpa [#allocation12], 0  ;;  %s650_s21 = smov [#allocation5]   ;;  %s21_s25 = sshll.u32 %s724_s0, 4  ;;  %s22_s25 = int_to_ptr.hbm [resolvable:$true] %s21_s25 }
   0x5   :  { %s34_s22 = sshll.u32 %s650_s21, 4  ;;  %s651_s26 = smov [#allocation2]   ;;  %s35_s22 = int_to_ptr.vmem [resolvable:$true] %s34_s22 }
   0x6   :  { %37 = dma.hbm_to_vmem [thread:$0]  %s33_s20, 128, %s35_s22, [#allocation6]  }
   0x7   :  { %s23_s27 = sshll.u32 %s651_s26, 4  ;;  %s43_s30 = sshll.u32 %s726_s2, 4  ;;  %s24_s27 = int_to_ptr.vmem [resolvable:$true] %s23_s27  ;;  %s44_s30 = int_to_ptr.hbm [resolvable:$true] %s43_s30 }
   0x8   :  { %26 = dma.hbm_to_vmem [thread:$0]  %s22_s25, 128, %s24_s27, [#allocation3]  }
   0x9   :  { %s53_s7 = sshll.u32 %s727_s3, 4  ;;  %s652_s8 = smov [#allocation7]   ;;  %s54_s7 = int_to_ptr.hbm [resolvable:$true] %s53_s7 }
   0xa   :  { %s45_s9 = sshll.u32 %s652_s8, 4  ;;  %s653_s0 = smov [#allocation8]   ;;  %s46_s9 = int_to_ptr.vmem [resolvable:$true] %s45_s9 }
   0xb   :  { %48 = dma.hbm_to_vmem [thread:$0]  %s44_s30, 128, %s46_s9, [#allocation6]  }
   0xc   :  { %s55_s10 = sshll.u32 %s653_s0, 4  ;;  %s654_s11 = smov 512   ;;  %s56_s10 = int_to_ptr.vmem [resolvable:$true] %s55_s10 }
   0xd   :  { %s655_s12 = smov 32  }
   0xe   :  { %61 = dma.hbm_to_vmem [thread:$0]  %s54_s7, 16384, %s56_s10, [#allocation9], %s654_s11, %s654_s11, %s655_s12  }
   0xf   :  { %640 = dma.done.wait [#allocation3], 128  }
  0x10   :  { %641 = vsyncadd [#allocation3], 4294967168 }
  0x11   :  { %642 = dma.done.wait [#allocation6], 256  }
  0x12   :  { %643 = vsyncadd [#allocation6], 4294967040 }
  0x13   :  { %644 = dma.done.wait [#allocation9], 16384  }
  0x14   :  { %645 = vsyncadd [#allocation9], 4294950912  ;;  %v141_v0 = vld [vmem:[#allocation8 + $0x1e8] sm:$0xff]  ;;  %v140_v4 = vld [vmem:[#allocation8 + $0x1e0] sm:$0xff]  ;;  %s656_s2 = smov [#allocation11]   ;;  %s452_s15 = sshll.u32 %s729_s5, 4  ;;  %s453_s15 = int_to_ptr.hbm [resolvable:$true] %s452_s15 }
  0x15   :  { %v205_v1 = vld [vmem:[#allocation8 + $0x3e8] sm:$0xff]  ;;  %248 = vmatpush.msra.mxu2 %v141_v0  ;;  %v204_v5 = vld [vmem:[#allocation8 + $0x3e0] sm:$0xff]  ;;  %208 = vmatpush.msra.mxu0 %v140_v4  ;;  %v143_v62 = vld [vmem:[#allocation8 + $0x1f8] sm:$0xff]  ;;  %s450_s3 = sshll.u32 %s656_s2, 4  ;;  %s657_s5 = smov [#allocation10]   ;;  %s451_s3 = int_to_ptr.vmem [resolvable:$true] %s450_s3 }
  0x16   :  { %v137_v2 = vld [vmem:[#allocation8 + $0x1c8] sm:$0xff]  ;;  %268 = vmatpush.msra.mxu3 %v205_v1  ;;  %228 = vmatpush.msra.mxu1 %v204_v5  ;;  %v136_v8 = vld [vmem:[#allocation8 + $0x1c0] sm:$0xff]  ;;  %v207_v63 = vld [vmem:[#allocation8 + $0x3f8] sm:$0xff]  ;;  %s439_s16 = sshll.u32 %s657_s5, 4  ;;  %s441_s19 = sshll.u32 %s728_s4, 4  ;;  %s440_s16 = int_to_ptr.vmem [resolvable:$true] %s439_s16  ;;  %s442_s19 = int_to_ptr.hbm [resolvable:$true] %s441_s19 }
  0x17   :  { %v201_v3 = vld [vmem:[#allocation8 + $0x3c8] sm:$0xff]  ;;  %249 = vmatpush.msra.mxu2 %v137_v2  ;;  %v200_v9 = vld [vmem:[#allocation8 + $0x3c0] sm:$0xff]  ;;  %209 = vmatpush.msra.mxu0 %v136_v8  ;;  %v139_v2 = vld [vmem:[#allocation8 + $0x1d8] sm:$0xff] }
  0x18   :  { %v133_v6 = vld [vmem:[#allocation8 + $0x1a8] sm:$0xff]  ;;  %269 = vmatpush.msra.mxu3 %v201_v3  ;;  %229 = vmatpush.msra.mxu1 %v200_v9  ;;  %v132_v12 = vld [vmem:[#allocation8 + $0x1a0] sm:$0xff]  ;;  %v203_v3 = vld [vmem:[#allocation8 + $0x3d8] sm:$0xff] }
  0x19   :  { %v197_v7 = vld [vmem:[#allocation8 + $0x3a8] sm:$0xff]  ;;  %v196_v13 = vld [vmem:[#allocation8 + $0x3a0] sm:$0xff]  ;;  %250 = vmatpush.msra.mxu2 %v133_v6  ;;  %210 = vmatpush.msra.mxu0 %v132_v12  ;;  %v142_v4 = vld [vmem:[#allocation8 + $0x1f0] sm:$0xff] }
  0x1a   :  { %v129_v10 = vld [vmem:[#allocation8 + $0x188] sm:$0xff]  ;;  %270 = vmatpush.msra.mxu3 %v197_v7  ;;  %v128_v14 = vld [vmem:[#allocation8 + $0x180] sm:$0xff]  ;;  %230 = vmatpush.msra.mxu1 %v196_v13  ;;  %v206_v5 = vld [vmem:[#allocation8 + $0x3f0] sm:$0xff] }
  0x1b   :  { %v193_v11 = vld [vmem:[#allocation8 + $0x388] sm:$0xff]  ;;  %v192_v15 = vld [vmem:[#allocation8 + $0x380] sm:$0xff]  ;;  %251 = vmatpush.msra.mxu2 %v129_v10  ;;  %211 = vmatpush.msra.mxu0 %v128_v14  ;;  %v135_v6 = vld [vmem:[#allocation8 + $0x1b8] sm:$0xff] }
  0x1c   :  { %v125_v16 = vld [vmem:[#allocation8 + $0x168] sm:$0xff]  ;;  %271 = vmatpush.msra.mxu3 %v193_v11  ;;  %v124_v18 = vld [vmem:[#allocation8 + $0x160] sm:$0xff]  ;;  %231 = vmatpush.msra.mxu1 %v192_v15  ;;  %v199_v7 = vld [vmem:[#allocation8 + $0x3b8] sm:$0xff] }
  0x1d   :  { %v189_v17 = vld [vmem:[#allocation8 + $0x368] sm:$0xff]  ;;  %v188_v19 = vld [vmem:[#allocation8 + $0x360] sm:$0xff]  ;;  %252 = vmatpush.msra.mxu2 %v125_v16  ;;  %212 = vmatpush.msra.mxu0 %v124_v18  ;;  %v138_v8 = vld [vmem:[#allocation8 + $0x1d0] sm:$0xff] }
  0x1e   :  { %v121_v20 = vld [vmem:[#allocation8 + $0x148] sm:$0xff]  ;;  %272 = vmatpush.msra.mxu3 %v189_v17  ;;  %v120_v22 = vld [vmem:[#allocation8 + $0x140] sm:$0xff]  ;;  %232 = vmatpush.msra.mxu1 %v188_v19  ;;  %v202_v9 = vld [vmem:[#allocation8 + $0x3d0] sm:$0xff] }
  0x1f   :  { %v185_v21 = vld [vmem:[#allocation8 + $0x348] sm:$0xff]  ;;  %v184_v23 = vld [vmem:[#allocation8 + $0x340] sm:$0xff]  ;;  %253 = vmatpush.msra.mxu2 %v121_v20  ;;  %213 = vmatpush.msra.mxu0 %v120_v22  ;;  %v131_v10 = vld [vmem:[#allocation8 + $0x198] sm:$0xff] }
  0x20   :  { %v117_v24 = vld [vmem:[#allocation8 + $0x128] sm:$0xff]  ;;  %273 = vmatpush.msra.mxu3 %v185_v21  ;;  %v116_v26 = vld [vmem:[#allocation8 + $0x120] sm:$0xff]  ;;  %233 = vmatpush.msra.mxu1 %v184_v23  ;;  %v195_v11 = vld [vmem:[#allocation8 + $0x398] sm:$0xff] }
  0x21   :  { %v181_v25 = vld [vmem:[#allocation8 + $0x328] sm:$0xff]  ;;  %v180_v27 = vld [vmem:[#allocation8 + $0x320] sm:$0xff]  ;;  %254 = vmatpush.msra.mxu2 %v117_v24  ;;  %214 = vmatpush.msra.mxu0 %v116_v26  ;;  %v702_v13 = vld [vmem:[#allocation5] sm:$0xff] }
  0x22   :  { %v113_v28 = vld [vmem:[#allocation8 + $0x108] sm:$0xff]  ;;  %274 = vmatpush.msra.mxu3 %v181_v25  ;;  %v112_v30 = vld [vmem:[#allocation8 + $0x100] sm:$0xff]  ;;  %234 = vmatpush.msra.mxu1 %v180_v27  ;;  %v134_v14 = vld [vmem:[#allocation8 + $0x1b0] sm:$0xff] }
  0x23   :  { %v177_v29 = vld [vmem:[#allocation8 + $0x308] sm:$0xff]  ;;  %v176_v31 = vld [vmem:[#allocation8 + $0x300] sm:$0xff]  ;;  %255 = vmatpush.msra.mxu2 %v113_v28  ;;  %215 = vmatpush.msra.mxu0 %v112_v30  ;;  %v198_v15 = vld [vmem:[#allocation8 + $0x3b0] sm:$0xff] }
  0x24   :  { %v109_v32 = vld [vmem:[#allocation8 + $0xe8] sm:$0xff]  ;;  %275 = vmatpush.msra.mxu3 %v177_v29  ;;  %v108_v34 = vld [vmem:[#allocation8 + $0xe0] sm:$0xff]  ;;  %235 = vmatpush.msra.mxu1 %v176_v31  ;;  %v127_v16 = vld [vmem:[#allocation8 + $0x178] sm:$0xff] }
  0x25   :  { %v173_v33 = vld [vmem:[#allocation8 + $0x2e8] sm:$0xff]  ;;  %v172_v35 = vld [vmem:[#allocation8 + $0x2e0] sm:$0xff]  ;;  %256 = vmatpush.msra.mxu2 %v109_v32  ;;  %216 = vmatpush.msra.mxu0 %v108_v34  ;;  %v191_v17 = vld [vmem:[#allocation8 + $0x378] sm:$0xff] }
  0x26   :  { %v105_v36 = vld [vmem:[#allocation8 + $0xc8] sm:$0xff]  ;;  %276 = vmatpush.msra.mxu3 %v173_v33  ;;  %v104_v38 = vld [vmem:[#allocation8 + $0xc0] sm:$0xff]  ;;  %236 = vmatpush.msra.mxu1 %v172_v35  ;;  %v130_v18 = vld [vmem:[#allocation8 + $0x190] sm:$0xff] }
  0x27   :  { %v169_v37 = vld [vmem:[#allocation8 + $0x2c8] sm:$0xff]  ;;  %v168_v39 = vld [vmem:[#allocation8 + $0x2c0] sm:$0xff]  ;;  %257 = vmatpush.msra.mxu2 %v105_v36  ;;  %217 = vmatpush.msra.mxu0 %v104_v38  ;;  %v194_v19 = vld [vmem:[#allocation8 + $0x390] sm:$0xff] }
  0x28   :  { %v101_v40 = vld [vmem:[#allocation8 + $0xa8] sm:$0xff]  ;;  %277 = vmatpush.msra.mxu3 %v169_v37  ;;  %v100_v42 = vld [vmem:[#allocation8 + $0xa0] sm:$0xff]  ;;  %237 = vmatpush.msra.mxu1 %v168_v39  ;;  %v123_v20 = vld [vmem:[#allocation8 + $0x158] sm:$0xff] }
  0x29   :  { %v165_v41 = vld [vmem:[#allocation8 + $0x2a8] sm:$0xff]  ;;  %v164_v43 = vld [vmem:[#allocation8 + $0x2a0] sm:$0xff]  ;;  %258 = vmatpush.msra.mxu2 %v101_v40  ;;  %218 = vmatpush.msra.mxu0 %v100_v42  ;;  %v187_v21 = vld [vmem:[#allocation8 + $0x358] sm:$0xff] }
  0x2a   :  { %v97_v44 = vld [vmem:[#allocation8 + $0x88] sm:$0xff]  ;;  %278 = vmatpush.msra.mxu3 %v165_v41  ;;  %v96_v46 = vld [vmem:[#allocation8 + $0x80] sm:$0xff]  ;;  %238 = vmatpush.msra.mxu1 %v164_v43  ;;  %v126_v22 = vld [vmem:[#allocation8 + $0x170] sm:$0xff] }
  0x2b   :  { %v161_v45 = vld [vmem:[#allocation8 + $0x288] sm:$0xff]  ;;  %v160_v47 = vld [vmem:[#allocation8 + $0x280] sm:$0xff]  ;;  %259 = vmatpush.msra.mxu2 %v97_v44  ;;  %219 = vmatpush.msra.mxu0 %v96_v46  ;;  %v190_v23 = vld [vmem:[#allocation8 + $0x370] sm:$0xff] }
  0x2c   :  { %v93_v48 = vld [vmem:[#allocation8 + $0x68] sm:$0xff]  ;;  %279 = vmatpush.msra.mxu3 %v161_v45  ;;  %v92_v50 = vld [vmem:[#allocation8 + $0x60] sm:$0xff]  ;;  %239 = vmatpush.msra.mxu1 %v160_v47  ;;  %v119_v24 = vld [vmem:[#allocation8 + $0x138] sm:$0xff] }
  0x2d   :  { %v157_v49 = vld [vmem:[#allocation8 + $0x268] sm:$0xff]  ;;  %v156_v51 = vld [vmem:[#allocation8 + $0x260] sm:$0xff]  ;;  %260 = vmatpush.msra.mxu2 %v93_v48  ;;  %220 = vmatpush.msra.mxu0 %v92_v50  ;;  %v183_v25 = vld [vmem:[#allocation8 + $0x338] sm:$0xff] }
  0x2e   :  { %v89_v52 = vld [vmem:[#allocation8 + $0x48] sm:$0xff]  ;;  %280 = vmatpush.msra.mxu3 %v157_v49  ;;  %v88_v54 = vld [vmem:[#allocation8 + $0x40] sm:$0xff]  ;;  %240 = vmatpush.msra.mxu1 %v156_v51  ;;  %v122_v26 = vld [vmem:[#allocation8 + $0x150] sm:$0xff] }
  0x2f   :  { %v153_v53 = vld [vmem:[#allocation8 + $0x248] sm:$0xff]  ;;  %v152_v55 = vld [vmem:[#allocation8 + $0x240] sm:$0xff]  ;;  %261 = vmatpush.msra.mxu2 %v89_v52  ;;  %221 = vmatpush.msra.mxu0 %v88_v54  ;;  %v186_v27 = vld [vmem:[#allocation8 + $0x350] sm:$0xff] }
  0x30   :  { %v85_v56 = vld [vmem:[#allocation8 + $0x28] sm:$0xff]  ;;  %281 = vmatpush.msra.mxu3 %v153_v53  ;;  %v84_v58 = vld [vmem:[#allocation8 + $0x20] sm:$0xff]  ;;  %241 = vmatpush.msra.mxu1 %v152_v55  ;;  %v115_v28 = vld [vmem:[#allocation8 + $0x118] sm:$0xff] }
  0x31   :  { %v149_v57 = vld [vmem:[#allocation8 + $0x228] sm:$0xff]  ;;  %v148_v59 = vld [vmem:[#allocation8 + $0x220] sm:$0xff]  ;;  %262 = vmatpush.msra.mxu2 %v85_v56  ;;  %222 = vmatpush.msra.mxu0 %v84_v58  ;;  %v179_v29 = vld [vmem:[#allocation8 + $0x318] sm:$0xff] }
  0x32   :  { %v81_v60 = vld [vmem:[#allocation8 + $0x8] sm:$0xff]  ;;  %282 = vmatpush.msra.mxu3 %v149_v57  ;;  %242 = vmatpush.msra.mxu1 %v148_v59  ;;  %v80_v0 = vld [vmem:[#allocation8] sm:$0xff]  ;;  %v118_v30 = vld [vmem:[#allocation8 + $0x130] sm:$0xff] }
  0x33   :  { %v145_v61 = vld [vmem:[#allocation8 + $0x208] sm:$0xff]  ;;  %v144_v1 = vld [vmem:[#allocation8 + $0x200] sm:$0xff]  ;;  %263 = vmatpush.msra.mxu2 %v81_v60  ;;  %223 = vmatpush.msra.mxu0 %v80_v0  ;;  %v182_v31 = vld [vmem:[#allocation8 + $0x330] sm:$0xff] }
  0x34   :  { %283 = vmatpush.msra.mxu3 %v145_v61  ;;  %243 = vmatpush.msra.mxu1 %v144_v1  ;;  %v700_v12 = vld [vmem:[#allocation2] sm:$0xff]  ;;  %v111_v32 = vld [vmem:[#allocation8 + $0xf8] sm:$0xff]  ;;  %v114_v34 = vld [vmem:[#allocation8 + $0x110] sm:$0xff] }
  0x35   :  { %328 = vmatpush.msrb.mxu2 %v143_v62  ;;  %288 = vmatpush.msrb.mxu0 %v142_v4  ;;  %v175_v33 = vld [vmem:[#allocation8 + $0x2f8] sm:$0xff]  ;;  %v178_v35 = vld [vmem:[#allocation8 + $0x310] sm:$0xff] }
  0x36   :  { %348 = vmatpush.msrb.mxu3 %v207_v63  ;;  %308 = vmatpush.msrb.mxu1 %v206_v5  ;;  %v107_v36 = vld [vmem:[#allocation8 + $0xd8] sm:$0xff]  ;;  %v110_v38 = vld [vmem:[#allocation8 + $0xf0] sm:$0xff] }
  0x37   :  { %329 = vmatpush.msrb.mxu2 %v139_v2  ;;  %289 = vmatpush.msrb.mxu0 %v138_v8  ;;  %v171_v37 = vld [vmem:[#allocation8 + $0x2d8] sm:$0xff]  ;;  %v174_v39 = vld [vmem:[#allocation8 + $0x2f0] sm:$0xff] }
  0x38   :  { %349 = vmatpush.msrb.mxu3 %v203_v3  ;;  %309 = vmatpush.msrb.mxu1 %v202_v9  ;;  %v103_v40 = vld [vmem:[#allocation8 + $0xb8] sm:$0xff]  ;;  %v106_v42 = vld [vmem:[#allocation8 + $0xd0] sm:$0xff] }
  0x39   :  { %330 = vmatpush.msrb.mxu2 %v135_v6  ;;  %284 = vmatmul.f32.vlgmr.msra.gmra.mxu3 %v702_v13  ;;  %v167_v41 = vld [vmem:[#allocation8 + $0x2b8] sm:$0xff]  ;;  %v170_v43 = vld [vmem:[#allocation8 + $0x2d0] sm:$0xff] }
  0x3a   :  { %350 = vmatpush.msrb.mxu3 %v199_v7  ;;  %264 = vmatmul.f32.vlgmr.msra.gmra.mxu2 %v700_v12  ;;  %v99_v44 = vld [vmem:[#allocation8 + $0x98] sm:$0xff]  ;;  %v102_v46 = vld [vmem:[#allocation8 + $0xb0] sm:$0xff] }
  0x3b   :  { %331 = vmatpush.msrb.mxu2 %v131_v10  ;;  %290 = vmatpush.msrb.mxu0 %v134_v14  ;;  %v163_v45 = vld [vmem:[#allocation8 + $0x298] sm:$0xff]  ;;  %v166_v47 = vld [vmem:[#allocation8 + $0x2b0] sm:$0xff] }
  0x3c   :  { %351 = vmatpush.msrb.mxu3 %v195_v11  ;;  %310 = vmatpush.msrb.mxu1 %v198_v15  ;;  %v95_v48 = vld [vmem:[#allocation8 + $0x78] sm:$0xff]  ;;  %v98_v50 = vld [vmem:[#allocation8 + $0x90] sm:$0xff] }
  0x3d   :  { %332 = vmatpush.msrb.mxu2 %v127_v16  ;;  %291 = vmatpush.msrb.mxu0 %v130_v18  ;;  %v159_v49 = vld [vmem:[#allocation8 + $0x278] sm:$0xff]  ;;  %v162_v51 = vld [vmem:[#allocation8 + $0x290] sm:$0xff] }
  0x3e   :  { %352 = vmatpush.msrb.mxu3 %v191_v17  ;;  %311 = vmatpush.msrb.mxu1 %v194_v19  ;;  %v91_v52 = vld [vmem:[#allocation8 + $0x58] sm:$0xff]  ;;  %v94_v54 = vld [vmem:[#allocation8 + $0x70] sm:$0xff] }
  0x3f   :  { %333 = vmatpush.msrb.mxu2 %v123_v20  ;;  %292 = vmatpush.msrb.mxu0 %v126_v22  ;;  %v155_v53 = vld [vmem:[#allocation8 + $0x258] sm:$0xff]  ;;  %v158_v55 = vld [vmem:[#allocation8 + $0x270] sm:$0xff] }
  0x40   :  { %353 = vmatpush.msrb.mxu3 %v187_v21  ;;  %312 = vmatpush.msrb.mxu1 %v190_v23  ;;  %v87_v56 = vld [vmem:[#allocation8 + $0x38] sm:$0xff]  ;;  %v90_v58 = vld [vmem:[#allocation8 + $0x50] sm:$0xff] }
  0x41   :  { %334 = vmatpush.msrb.mxu2 %v119_v24  ;;  %224 = vmatmul.f32.vlgmr.msra.gmra.mxu0 %v700_v12  ;;  %v151_v57 = vld [vmem:[#allocation8 + $0x238] sm:$0xff]  ;;  %v154_v59 = vld [vmem:[#allocation8 + $0x250] sm:$0xff] }
  0x42   :  { %354 = vmatpush.msrb.mxu3 %v183_v25  ;;  %244 = vmatmul.f32.vlgmr.msra.gmra.mxu1 %v702_v13  ;;  %v83_v60 = vld [vmem:[#allocation8 + $0x18] sm:$0xff]  ;;  %v86_v62 = vld [vmem:[#allocation8 + $0x30] sm:$0xff] }
  0x43   :  { %293 = vmatpush.msrb.mxu0 %v122_v26  ;;  %313 = vmatpush.msrb.mxu1 %v186_v27  ;;  %v147_v61 = vld [vmem:[#allocation8 + $0x218] sm:$0xff]  ;;  %v150_v63 = vld [vmem:[#allocation8 + $0x230] sm:$0xff] }
  0x44   :  { %335 = vmatpush.msrb.mxu2 %v115_v28  ;;  %355 = vmatpush.msrb.mxu3 %v179_v29  ;;  %v82_v0 = vld [vmem:[#allocation8 + $0x10] sm:$0xff] }
  0x45   :  { %294 = vmatpush.msrb.mxu0 %v118_v30  ;;  %314 = vmatpush.msrb.mxu1 %v182_v31  ;;  %v146_v1 = vld [vmem:[#allocation8 + $0x210] sm:$0xff] }
  0x46   :  { %336 = vmatpush.msrb.mxu2 %v111_v32  ;;  %356 = vmatpush.msrb.mxu3 %v175_v33 }
  0x47   :  { %295 = vmatpush.msrb.mxu0 %v114_v34  ;;  %315 = vmatpush.msrb.mxu1 %v178_v35 }
  0x48   :  { %337 = vmatpush.msrb.mxu2 %v107_v36  ;;  %357 = vmatpush.msrb.mxu3 %v171_v37  ;;  %v426_v36 = vld [vmem:[#allocation7] sm:$0xff] }
  0x49   :  { %296 = vmatpush.msrb.mxu0 %v110_v38  ;;  %316 = vmatpush.msrb.mxu1 %v174_v39 }
  0x4a   :  { %338 = vmatpush.msrb.mxu2 %v103_v40  ;;  %358 = vmatpush.msrb.mxu3 %v167_v41 }
  0x4b   :  { %297 = vmatpush.msrb.mxu0 %v106_v42  ;;  %317 = vmatpush.msrb.mxu1 %v170_v43 }
  0x4c   :  { %339 = vmatpush.msrb.mxu2 %v99_v44  ;;  %359 = vmatpush.msrb.mxu3 %v163_v45 }
  0x4d   :  { %298 = vmatpush.msrb.mxu0 %v102_v46  ;;  %318 = vmatpush.msrb.mxu1 %v166_v47 }
  0x4e   :  { %340 = vmatpush.msrb.mxu2 %v95_v48  ;;  %360 = vmatpush.msrb.mxu3 %v159_v49 }
  0x4f   :  { %299 = vmatpush.msrb.mxu0 %v98_v50  ;;  %319 = vmatpush.msrb.mxu1 %v162_v51 }
  0x50   :  { %341 = vmatpush.msrb.mxu2 %v91_v52  ;;  %361 = vmatpush.msrb.mxu3 %v155_v53 }
  0x51   :  { %300 = vmatpush.msrb.mxu0 %v94_v54  ;;  %320 = vmatpush.msrb.mxu1 %v158_v55 }
  0x52   :  { %342 = vmatpush.msrb.mxu2 %v87_v56  ;;  %362 = vmatpush.msrb.mxu3 %v151_v57 }
  0x53   :  { %301 = vmatpush.msrb.mxu0 %v90_v58  ;;  %321 = vmatpush.msrb.mxu1 %v154_v59 }
  0x54   :  { %343 = vmatpush.msrb.mxu2 %v83_v60  ;;  %363 = vmatpush.msrb.mxu3 %v147_v61 }
  0x55   :  { %302 = vmatpush.msrb.mxu0 %v86_v62  ;;  %322 = vmatpush.msrb.mxu1 %v150_v63 }
  0x56   :  { %344 = vmatmul.f32.vlgmr.msrb.gmra.mxu2 %v700_v12  ;;  %364 = vmatmul.f32.vlgmr.msrb.gmra.mxu3 %v702_v13 }
  0x57   :  { %303 = vmatpush.msrb.mxu0 %v82_v0  ;;  %323 = vmatpush.msrb.mxu1 %v146_v1 }
  0x58   :  { %304 = vmatmul.f32.vlgmr.msrb.gmra.mxu0 %v700_v12  ;;  %324 = vmatmul.f32.vlgmr.msrb.gmra.mxu1 %v702_v13 }
  0xbc   :  { %v285_v3 = vpop.f32.mrf.mxu3 }
  0xbd   :  { %v265_v2 = vpop.f32.mrf.mxu2 }
  0xbe   :  { %v225_v4 = vpop.f32.mrf.mxu0  ;;  %v286_v6 = vadd.f32 %v285_v3, %v265_v2 }
  0xbf   :  { %v245_v5 = vpop.f32.mrf.mxu1 }
  0xc0   :  { %v246_v7 = vadd.f32 %v245_v5, %v225_v4  ;;  %v470_v8 = vmul.f32 -1.442695, %v286_v6 }
  0xc2   :  { %v469_v9 = vmul.f32 -1.442695, %v246_v7  ;;  %480 = vpow2.f32 %v470_v8 }
  0xc4   :  { %482 = vpow2.f32 %v469_v9 }
  0xc8   :  { %v481_v10 = vpop.eup %480 }
  0xc9   :  { %v390_v14 = vadd.f32 1.0, %v481_v10 }
  0xca   :  { %v483_v11 = vpop.eup %482 }
  0xcb   :  { %v371_v15 = vadd.f32 1.0, %v483_v11  ;;  %484 = vrcp.f32 %v390_v14  ;;  %vm396_vm0 = vweird.f32 %v390_v14  ;;  %v402_v18 = vand.u32 2147483648, %v390_v14 }
  0xcc   :  { %v400_v19 = vand.u32 2147483647, %v390_v14 }
  0xcd   :  { %486 = vrcp.f32 %v371_v15  ;;  %vm377_vm2 = vweird.f32 %v371_v15  ;;  %v383_v23 = vand.u32 2147483648, %v371_v15  ;;  %v381_v26 = vand.u32 2147483647, %v371_v15 }
  0xce   :  { %v403_v29 = vor.u32 1.1754944e-38, %v402_v18  ;;  %vm401_vm6 = vcmp.eq.f32.partialorder %v400_v19, 8.507059e+37 }
  0xcf   :  { %v384_v31 = vor.u32 1.1754944e-38, %v383_v23  ;;  %vm382_vm7 = vcmp.eq.f32.partialorder %v381_v26, 8.507059e+37 }
  0xd1   :  { %v485_v16 = vpop.eup %484 }
  0xd2   :  { %v392_v17 = vmul.f32 %v485_v16, %v390_v14  ;;  %vm397_vm1 = vweird.f32 %v485_v16 }
  0xd3   :  { %v487_v12 = vpop.eup %486  ;;  %vm712_vm4 = vmor %vm396_vm0, %vm397_vm1 }
  0xd4   :  { %v373_v13 = vmul.f32 %v487_v12, %v371_v15  ;;  %v393_v20 = vsub.f32 1.0, %v392_v17  ;;  %vm378_vm3 = vweird.f32 %v487_v12 }
  0xd5   :  { %v305_v21 = vpop.f32.mrf.mxu0  ;;  %v325_v22 = vpop.f32.mrf.mxu1  ;;  %vm379_vm5 = vmor %vm377_vm2, %vm378_vm3 }
  0xd6   :  { %v374_v24 = vsub.f32 1.0, %v373_v13  ;;  %v326_v25 = vadd.f32 %v325_v22, %v305_v21  ;;  %v394_v27 = vmul.f32 %v485_v16, %v393_v20 }
  0xd8   :  { %v375_v30 = vmul.f32 %v487_v12, %v374_v24  ;;  %488 = vtanh.f32 %v326_v25  ;;  %v395_v32 = vadd.f32 %v485_v16, %v394_v27 }
  0xd9   :  { %v345_v33 = vpop.f32.mrf.mxu2  ;;  %v365_v34 = vpop.f32.mrf.mxu3 }
  0xda   :  { %v376_v35 = vadd.f32 %v487_v12, %v375_v30  ;;  %v366_v37 = vadd.f32 %v365_v34, %v345_v33  ;;  %v399_v38 = vsel %vm712_vm4, %v485_v16, %v395_v32 }
  0xdb   :  { %v404_v40 = vsel %vm401_vm6, %v403_v29, %v399_v38 }
  0xdc   :  { %v380_v39 = vsel %vm379_vm5, %v487_v12, %v376_v35  ;;  %v471_v41 = vmul.f32 -1.442695, %v366_v37  ;;  %v427_v43 = vmul.f32 %v426_v36, %v404_v40 }
  0xdd   :  { %v385_v42 = vsel %vm382_vm7, %v384_v31, %v380_v39 }
  0xde   :  { %v489_v44 = vpop.eup %488  ;;  %490 = vpow2.f32 %v471_v41 }
  0xdf   :  { %v428_v45 = vmul.f32 %v489_v44, %v385_v42 }
  0xe1   :  { %v429_v46 = vadd.f32 %v428_v45, %v427_v43 }
  0xe3   :  { %432 = vst [vmem:[#allocation11] sm:$0xff] %v429_v46 }
  0xe4   :  { %v491_v47 = vpop.eup %490  ;;  %455 = dma.vmem_to_hbm [thread:$0]  %s451_s3, 128, %s453_s15, [#allocation12]  }
  0xe5   :  { %v410_v48 = vadd.f32 1.0, %v491_v47 }
  0xe7   :  { %492 = vrcp.f32 %v410_v48  ;;  %v422_v52 = vand.u32 2147483648, %v410_v48  ;;  %v420_v54 = vand.u32 2147483647, %v410_v48  ;;  %vm416_vm9 = vweird.f32 %v410_v48 }
  0xe8   :  { %494 = vtanh.f32 %v429_v46 }
  0xe9   :  { %v423_v56 = vor.u32 1.1754944e-38, %v422_v52  ;;  %vm421_vm11 = vcmp.eq.f32.partialorder %v420_v54, 8.507059e+37 }
  0xed   :  { %v493_v49 = vpop.eup %492 }
  0xee   :  { %v412_v50 = vmul.f32 %v493_v49, %v410_v48  ;;  %vm417_vm8 = vweird.f32 %v493_v49  ;;  %v495_v58 = vpop.eup %494 }
  0xef   :  { %vm418_vm10 = vmor %vm416_vm9, %vm417_vm8 }
  0xf0   :  { %v413_v51 = vsub.f32 1.0, %v412_v50 }
  0xf2   :  { %v414_v53 = vmul.f32 %v493_v49, %v413_v51 }
  0xf4   :  { %v415_v55 = vadd.f32 %v493_v49, %v414_v53 }
  0xf6   :  { %v419_v57 = vsel %vm418_vm10, %v493_v49, %v415_v55 }
  0xf7   :  { %v424_v59 = vsel %vm421_vm11, %v423_v56, %v419_v57 }
  0xf8   :  { %v431_v60 = vmul.f32 %v495_v58, %v424_v59 }
  0xfa   :  { %433 = vst [vmem:[#allocation10] sm:$0xff] %v431_v60 }
  0xfb   :  { %444 = dma.vmem_to_hbm [thread:$0]  %s440_s16, 128, %s442_s19, [#allocation4]  }
  0xfc   :  { %646 = dma.done.wait [#allocation4], 128  }
  0xfd   :  { %647 = vsyncadd [#allocation4], 4294967168 }
  0xfe   :  { %648 = dma.done.wait [#allocation12], 128  }
  0xff   :  { %649 = vsyncadd [#allocation12], 4294967168 }
 0x100   :  { %464 = vsyncpa [#allocation3], 1 }
 0x101   :  { %465 = vsyncpa [#allocation6], 1 }
 0x102   :  { %466 = vsyncpa [#allocation9], 1 }
 0x103   :  { %467 = vsyncpa [#allocation4], 1 }
 0x104   :  { %468 = vsyncpa [#allocation12], 1 }

</bundles_post_ra>
